<compile_context>
chip_gen: v5e
topology: v5e:2x2
jax: 0.10.0
libtpu: 0.0.40
codegen_flags: <defaults>
</compile_context>

<pallas_src>
import functools

import jax
import jax.numpy as jnp
from jax.experimental import pallas as pl
from jax.experimental.pallas import tpu as pltpu

LANES = 128


def _tpu_config():
    """Per-generation (num_cores, max_block_rows)."""
    try:
        kind = jax.devices()[0].device_kind.lower()
    except Exception:  # pragma: no cover - defensive default
        kind = ""
    # Only v7x has 2 TensorCores per chip; the core-split axis is pure
    # overhead on single-TC chips (v5e / v6e).
    num_cores = 2 if ("v7" in kind or "7x" in kind) else 1
    if "v5" in kind:
        # v5e default scoped VMEM is 16 MiB: 4096 rows f32 -> 2 MiB/input/buf,
        # 2 inputs x 2 buffers = 8 MiB.
        max_rows = 4096
    else:
        # v6e / v7x default scoped VMEM is 32 MiB: 8192 rows f32 -> 4 MiB each,
        # 16 MiB total with double buffering (v7x 64 MiB physical budget safe).
        max_rows = 8192
    return num_cores, max_rows


def _bd_loss_kernel(pred_ref, target_ref, out_ref, acc_ref, *, rows, block_rows):
    c = pl.program_id(0)           # core-split axis ("parallel", size 1 or 2)
    i = pl.program_id(1)           # block/reduction axis ("arbitrary")
    inner = pl.num_programs(1)
    gblk = c * inner + i           # un-clamped global block index

    @pl.when(i == 0)
    def _init():
        acc_ref[...] = jnp.zeros_like(acc_ref)

    # Upcast in VMEM (cheap on the VPU); HBM traffic stays in native dtype.
    p = jax.nn.sigmoid(pred_ref[...].astype(jnp.float32))
    t = target_ref[...].astype(jnp.float32)
    prod = p * t

    def _accumulate(x):
        if block_rows % 8 == 0:
            # Layout no-op reshape; reduction over leading axis = pure vreg adds.
            acc_ref[...] += x.reshape(block_rows // 8, 8, LANES).sum(axis=0)
        else:
            # Small full-block-in-one-tile fallback (rows < 8 or not /8).
            acc_ref[0:1, :] += x.sum(axis=0, keepdims=True)

    full_blocks = rows // block_rows   # blocks fully inside the logical array

    @pl.when(gblk < full_blocks)
    def _interior():
        _accumulate(prod)

    @pl.when(gblk >= full_blocks)
    def _edge():
        # Ragged last block or clamped re-read past the end: mask rows past
        # the logical extent.  Mask is applied after prod is formed, so any
        # NaN/Inf from unspecified padded data is discarded.
        row_ids = gblk * block_rows + jax.lax.broadcasted_iota(
            jnp.int32, prod.shape, 0)
        _accumulate(jnp.where(row_ids < rows, prod, 0.0))

    @pl.when(i == inner - 1)
    def _finalize():
        out_ref[0] = acc_ref[...]   # lane-dense (8, 128) per-core partials


def bd_loss(pred, target, reduction="mean"):
    """JAX/Pallas equivalent of BD_loss.forward(pred, target)."""
    assert pred.shape == target.shape
    total = pred.size

    if reduction == "mean":
        if total == 0:
            return jnp.float32(jnp.nan)   # torch .mean() of an empty tensor
        scale = 1.0 / float(total)
    elif reduction == "sum":
        if total == 0:
            return jnp.float32(0.0)
        scale = 1.0
    else:
        raise ValueError(f"unsupported reduction: {reduction}")

    # Flatten (bitcast reshape, no copy); keep native dtypes.
    flat_p = pred.reshape(-1)
    flat_t = target.reshape(-1)

    rem = total % LANES
    main = total - rem

    # Tiny (<128 element) tail handled directly in the wrapper -- no full-array
    # jnp.pad copies of the two streams.
    tail_sum = jnp.float32(0.0)
    if rem:
        tail_sum = jnp.sum(
            jax.nn.sigmoid(flat_p[main:].astype(jnp.float32))
            * flat_t[main:].astype(jnp.float32))

    if main == 0:
        return (tail_sum * jnp.float32(scale)).astype(jnp.float32)

    rows = main // LANES
    p2 = flat_p[:main].reshape(rows, LANES)   # when rem==0 this is a pure view
    t2 = flat_t[:main].reshape(rows, LANES)

    num_cores, max_rows = _tpu_config()
    block_rows = rows if rows <= max_rows else max_rows
    nblocks = pl.cdiv(rows, block_rows)
    num_cores = min(num_cores, nblocks)       # don't split fewer blocks than cores
    inner = pl.cdiv(nblocks, num_cores)

    def in_map(c, i):
        # Clamp so steps past the last block re-read a valid block; the kernel
        # masks their contribution to zero.
        return (jnp.minimum(c * inner + i, nblocks - 1), 0)

    bytes_accessed = (
        main * (p2.dtype.itemsize + t2.dtype.itemsize)
        + num_cores * 8 * LANES * 4)

    out = pl.pallas_call(
        functools.partial(_bd_loss_kernel, rows=rows, block_rows=block_rows),
        out_shape=jax.ShapeDtypeStruct((num_cores, 8, LANES), jnp.float32),
        grid_spec=pltpu.PrefetchScalarGridSpec(
            num_scalar_prefetch=0,
            grid=(num_cores, inner),
            in_specs=[
                pl.BlockSpec((block_rows, LANES), in_map),
                pl.BlockSpec((block_rows, LANES), in_map),
            ],
            out_specs=pl.BlockSpec((1, 8, LANES), lambda c, i: (c, 0, 0)),
            scratch_shapes=[pltpu.VMEM((8, LANES), jnp.float32)],
        ),
        compiler_params=pltpu.CompilerParams(
            # On v7x the leading size-2 axis shards the stream across both
            # TensorCores; on v5e/v6e num_cores==1 so this is a plain 1-block axis.
            dimension_semantics=("parallel", "arbitrary"),
        ),
        cost_estimate=pl.CostEstimate(
            flops=2 * main, transcendentals=main, bytes_accessed=bytes_accessed),
    )(p2, t2)

    # Tiny final reduce over the (num_cores, 8, 128) per-lane partials.
    return ((jnp.sum(out) + tail_sum) * jnp.float32(scale)).astype(jnp.float32)


if __name__ == "__main__":
    key = jax.random.PRNGKey(0)
    k1, k2, k3, k4 = jax.random.split(key, 4)

    # Case 1: f32 logits / f32 binary targets (NCHW), size a multiple of 128
    # (zero-copy path: reshape-only into the kernel).
    pred = jax.random.normal(k1, (2, 4, 16, 16), dtype=jnp.float32)
    target = (jax.random.uniform(k2, (2, 4, 16, 16)) > 0.5).astype(jnp.float32)

    loss_mean = jax.block_until_ready(bd_loss(pred, target, reduction="mean"))
    loss_sum = jax.block_until_ready(bd_loss(pred, target, reduction="sum"))

    bd = jax.nn.sigmoid(pred) * target
    ref_mean = jnp.mean(bd)
    ref_sum = jnp.sum(bd)
    assert jnp.allclose(loss_mean, ref_mean, rtol=1e-5, atol=1e-6), (loss_mean, ref_mean)
    assert jnp.allclose(loss_sum, ref_sum, rtol=1e-5, atol=1e-4), (loss_sum, ref_sum)

    # Case 2: bf16 logits / f32 targets, size NOT a multiple of 128 (exercises
    # the wrapper tail path, mixed dtypes, and the small-block accumulator).
    pred_b = jax.random.normal(k3, (3, 5, 7, 11), dtype=jnp.bfloat16)
    target_b = (jax.random.uniform(k4, (3, 5, 7, 11)) > 0.5).astype(jnp.float32)
    loss_b = jax.block_until_ready(bd_loss(pred_b, target_b, reduction="mean"))
    ref_b = jnp.mean(jax.nn.sigmoid(pred_b.astype(jnp.float32)) * target_b)
    assert jnp.allclose(loss_b, ref_b, rtol=1e-4, atol=1e-5), (loss_b, ref_b)

    print("KERNEL_OK")
</pallas_src>

<mosaic_0001>
module attributes {stable_mosaic.version = 11 : i64} {
  func.func @_bd_loss_kernel(%arg0: i32, %arg1: i32, %arg2: memref<16x128xf32, #tpu.memory_space<vmem>>, %arg3: memref<16x128xf32, #tpu.memory_space<vmem>>, %arg4: memref<1x8x128xf32, #tpu.memory_space<vmem>>, %arg5: memref<8x128xf32, #tpu.memory_space<vmem>>) attributes {dimension_semantics = [#tpu.dimension_semantics<parallel>, #tpu.dimension_semantics<arbitrary>], iteration_bounds = array<i64: 1, 1>, scalar_prefetch = 0 : i64, scratch_operands = 1 : i64, tpu.core_type = #tpu.core_type<tc>, window_params = [{transform_indices = @transform_0, window_bounds = array<i64: 16, 128>}, {transform_indices = @transform_1, window_bounds = array<i64: 16, 128>}, {transform_indices = @transform_2, window_bounds = array<i64: 1, 8, 128>}]} {
    %c1_i32 = arith.constant 1 : i32
    %0 = arith.muli %arg0, %c1_i32 : i32
    %1 = arith.addi %0, %arg1 : i32
    %c0_i32 = arith.constant 0 : i32
    %2 = arith.cmpi eq, %arg1, %c0_i32 : i32
    %3 = arith.extui %2 : i1 to i32
    %c0_i32_0 = arith.constant 0 : i32
    %4 = arith.cmpi ne, %3, %c0_i32_0 : i32
    scf.if %4 {
      %cst_10 = arith.constant 0.000000e+00 : f32
      %22 = vector.broadcast %cst_10 : f32 to vector<8x128xf32>
      %c0_11 = arith.constant 0 : index
      %c0_12 = arith.constant 0 : index
      %23 = vector.load %arg5[%c0_11, %c0_12] : memref<8x128xf32, #tpu.memory_space<vmem>>, vector<8x128xf32>
      tpu.vector_store %arg5[%c0_11, %c0_12], %22 {strides = array<i32>} : memref<8x128xf32, #tpu.memory_space<vmem>>, vector<8x128xf32>,
    } else {
    }
    %c0 = arith.constant 0 : index
    %c0_1 = arith.constant 0 : index
    %5 = vector.load %arg2[%c0, %c0_1] : memref<16x128xf32, #tpu.memory_space<vmem>>, vector<16x128xf32>
    %6 = arith.negf %5 : vector<16x128xf32>
    %7 = math.exp %6 : vector<16x128xf32>
    %cst = arith.constant 1.000000e+00 : f32
    %8 = vector.broadcast %cst : f32 to vector<16x128xf32>
    %9 = arith.addf %8, %7 : vector<16x128xf32>
    %10 = arith.divf %8, %9 : vector<16x128xf32>
    %c0_2 = arith.constant 0 : index
    %c0_3 = arith.constant 0 : index
    %11 = vector.load %arg3[%c0_2, %c0_3] : memref<16x128xf32, #tpu.memory_space<vmem>>, vector<16x128xf32>
    %12 = arith.mulf %10, %11 : vector<16x128xf32>
    %c1_i32_4 = arith.constant 1 : i32
    %13 = arith.cmpi slt, %1, %c1_i32_4 : i32
    %14 = arith.extui %13 : i1 to i32
    %c0_i32_5 = arith.constant 0 : i32
    %15 = arith.cmpi ne, %14, %c0_i32_5 : i32
    scf.if %15 {
      %c0_10 = arith.constant 0 : index
      %c0_11 = arith.constant 0 : index
      %22 = vector.load %arg5[%c0_10, %c0_11] : memref<8x128xf32, #tpu.memory_space<vmem>>, vector<8x128xf32>
      %23 = vector.shape_cast %12 : vector<16x128xf32> to vector<2x8x128xf32>
      %cst_12 = arith.constant dense<0.000000e+00> : vector<8x128xf32>
      %24 = vector.multi_reduction <add>, %23, %cst_12 [0] : vector<2x8x128xf32> to vector<8x128xf32>
      %25 = arith.addf %22, %24 : vector<8x128xf32>
      %c0_13 = arith.constant 0 : index
      %c0_14 = arith.constant 0 : index
      %26 = vector.load %arg5[%c0_13, %c0_14] : memref<8x128xf32, #tpu.memory_space<vmem>>, vector<8x128xf32>
      tpu.vector_store %arg5[%c0_13, %c0_14], %25 {strides = array<i32>} : memref<8x128xf32, #tpu.memory_space<vmem>>, vector<8x128xf32>,
    } else {
    }
    %c1_i32_6 = arith.constant 1 : i32
    %16 = arith.cmpi sge, %1, %c1_i32_6 : i32
    %17 = arith.extui %16 : i1 to i32
    %c0_i32_7 = arith.constant 0 : i32
    %18 = arith.cmpi ne, %17, %c0_i32_7 : i32
    scf.if %18 {
      %c16_i32 = arith.constant 16 : i32
      %22 = arith.muli %1, %c16_i32 : i32
      %23 = tpu.iota {dimensions = array<i32: 0>} : vector<16x128xi32>
      %24 = vector.broadcast %22 : i32 to vector<16x128xi32>
      %25 = arith.addi %24, %23 : vector<16x128xi32>
      %c16_i32_10 = arith.constant 16 : i32
      %26 = vector.broadcast %c16_i32_10 : i32 to vector<16x128xi32>
      %27 = arith.cmpi slt, %25, %26 : vector<16x128xi32>
      %cst_11 = arith.constant 0.000000e+00 : f32
      %28 = vector.broadcast %cst_11 : f32 to vector<16x128xf32>
      %29 = arith.select %27, %12, %28 : vector<16x128xi1>, vector<16x128xf32>
      %c0_12 = arith.constant 0 : index
      %c0_13 = arith.constant 0 : index
      %30 = vector.load %arg5[%c0_12, %c0_13] : memref<8x128xf32, #tpu.memory_space<vmem>>, vector<8x128xf32>
      %31 = vector.shape_cast %29 : vector<16x128xf32> to vector<2x8x128xf32>
      %cst_14 = arith.constant dense<0.000000e+00> : vector<8x128xf32>
      %32 = vector.multi_reduction <add>, %31, %cst_14 [0] : vector<2x8x128xf32> to vector<8x128xf32>
      %33 = arith.addf %30, %32 : vector<8x128xf32>
      %c0_15 = arith.constant 0 : index
      %c0_16 = arith.constant 0 : index
      %34 = vector.load %arg5[%c0_15, %c0_16] : memref<8x128xf32, #tpu.memory_space<vmem>>, vector<8x128xf32>
      tpu.vector_store %arg5[%c0_15, %c0_16], %33 {strides = array<i32>} : memref<8x128xf32, #tpu.memory_space<vmem>>, vector<8x128xf32>,
    } else {
    }
    %c0_i32_8 = arith.constant 0 : i32
    %19 = arith.cmpi eq, %arg1, %c0_i32_8 : i32
    %20 = arith.extui %19 : i1 to i32
    %c0_i32_9 = arith.constant 0 : i32
    %21 = arith.cmpi ne, %20, %c0_i32_9 : i32
    scf.if %21 {
      %c0_10 = arith.constant 0 : index
      %c0_11 = arith.constant 0 : index
      %22 = vector.load %arg5[%c0_10, %c0_11] : memref<8x128xf32, #tpu.memory_space<vmem>>, vector<8x128xf32>
      %c0_12 = arith.constant 0 : index
      %c0_13 = arith.constant 0 : index
      %c0_14 = arith.constant 0 : index
      %23 = vector.load %arg4[%c0_12, %c0_13, %c0_14] : memref<1x8x128xf32, #tpu.memory_space<vmem>>, vector<1x8x128xf32>
      %24 = vector.shape_cast %23 : vector<1x8x128xf32> to vector<8x128xf32>
      %25 = vector.shape_cast %22 : vector<8x128xf32> to vector<1x8x128xf32>
      tpu.vector_store %arg4[%c0_12, %c0_13, %c0_14], %25 {strides = array<i32>} : memref<1x8x128xf32, #tpu.memory_space<vmem>>, vector<1x8x128xf32>,
    } else {
    }
    return
  }
  func.func @transform_0(%arg0: i32, %arg1: i32) -> (i32, i32) {
    %c1_i32 = arith.constant 1 : i32
    %0 = arith.muli %arg0, %c1_i32 : i32
    %1 = arith.addi %0, %arg1 : i32
    %c0_i32 = arith.constant 0 : i32
    %2 = arith.minsi %1, %c0_i32 : i32
    %c0_i32_0 = arith.constant 0 : i32
    %c0_i32_1 = arith.constant 0 : i32
    return %2, %c0_i32_0 : i32, i32
  }
  func.func @transform_1(%arg0: i32, %arg1: i32) -> (i32, i32) {
    %c1_i32 = arith.constant 1 : i32
    %0 = arith.muli %arg0, %c1_i32 : i32
    %1 = arith.addi %0, %arg1 : i32
    %c0_i32 = arith.constant 0 : i32
    %2 = arith.minsi %1, %c0_i32 : i32
    %c0_i32_0 = arith.constant 0 : i32
    %c0_i32_1 = arith.constant 0 : i32
    return %2, %c0_i32_0 : i32, i32
  }
  func.func @transform_2(%arg0: i32, %arg1: i32) -> (i32, i32, i32) {
    %c0_i32 = arith.constant 0 : i32
    %c0_i32_0 = arith.constant 0 : i32
    %c0_i32_1 = arith.constant 0 : i32
    return %arg0, %c0_i32, %c0_i32_0 : i32, i32, i32
  }
}

</mosaic_0001>

<bundles_post_ra>
// kernel: tpu_custom_call.1
= control target key start
LH: loop header
LB: loop body
LE: loop exit
PB: predicated region body
PF: predicated region fallthrough
CT: control target
= control target key end

     0   :  { %7 = vsyncpa [#allocation4], 0  ;;  %s290_s0 = inlined_call_operand.hbm [shape: f32[16,128], index: 0, kind: input, shape index: {}]   ;;  %s291_s1 = inlined_call_operand.hbm [shape: f32[16,128], index: 1, kind: input, shape index: {}]   ;;  %s292_s2 = inlined_call_operand.hbm [shape: f32[1,8,128], index: 2, kind: output, shape index: {}]  }
   0x1   :  { %8 = vsyncpa [#allocation7], 0 }
   0x2   :  { %9 = vsyncpa [#allocation5], 0  ;;  %s20_s11 = sshll.u32 %s290_s0, 4  ;;  %s261_s12 = smov [#allocation3]   ;;  %s21_s11 = int_to_ptr.hbm [resolvable:$true] %s20_s11 }
   0x3   :  { %s22_s13 = sshll.u32 %s261_s12, 4  ;;  %s39_s16 = sshll.u32 %s291_s1, 4  ;;  %s23_s13 = int_to_ptr.vmem [resolvable:$true] %s22_s13  ;;  %s40_s16 = int_to_ptr.hbm [resolvable:$true] %s39_s16 }
   0x4   :  { %s262_s17 = smov 128   ;;  %s263_s18 = smov 8  }
   0x5   :  { %28 = dma.hbm_to_vmem [thread:$0]  %s21_s11, 256, %s23_s13, [#allocation4], %s262_s17, %s262_s17, %s263_s18  }
   0x6   :  { %s264_s19 = smov [#allocation6]  }
   0x7   :  { %s41_s20 = sshll.u32 %s264_s19, 4  ;;  %s42_s20 = int_to_ptr.vmem [resolvable:$true] %s41_s20 }
   0x8   :  { %47 = dma.hbm_to_vmem [thread:$0]  %s40_s16, 256, %s42_s20, [#allocation7], %s262_s17, %s262_s17, %s263_s18  }
   0x9   :  { %255 = dma.done.wait [#allocation4], 256  }
   0xa   :  { %256 = vsyncadd [#allocation4], 4294967040 }
   0xb   :  { %257 = dma.done.wait [#allocation7], 256  }
   0xc   :  { %258 = vsyncadd [#allocation7], 4294967040  ;;  %v70_v0 = vld [vmem:[#allocation3] sm:$0xff]  ;;  %v71_v1 = vld [vmem:[#allocation3 + $0x8] sm:$0xff]  ;;  %s265_s0 = smov [#allocation8]   ;;  %s153_s23 = sshll.u32 %s292_s2, 4  ;;  %s154_s23 = int_to_ptr.hbm [resolvable:$true] %s153_s23 }
   0xd   :  { %v168_v2 = vmul.f32 -1.442695, %v70_v0  ;;  %v169_v3 = vmul.f32 -1.442695, %v71_v1  ;;  %v110_v24 = vld [vmem:[#allocation6] sm:$0xff]  ;;  %v111_v26 = vld [vmem:[#allocation6 + $0x8] sm:$0xff] }
   0xe   :  { %s151_s1 = sshll.u32 %s265_s0, 4  ;;  %s152_s1 = int_to_ptr.vmem [resolvable:$true] %s151_s1 }
   0xf   :  { %175 = vpow2.f32 %v168_v2 }
  0x10   :  { %177 = vpow2.f32 %v169_v3 }
  0x15   :  { %v176_v4 = vpop.eup %175 }
  0x16   :  { %v178_v5 = vpop.eup %177  ;;  %v78_v6 = vadd.f32 1.0, %v176_v4 }
  0x17   :  { %v79_v7 = vadd.f32 1.0, %v178_v5 }
  0x18   :  { %179 = vrcp.f32 %v78_v6  ;;  %vm85_vm0 = vweird.f32 %v78_v6  ;;  %v91_v11 = vand.u32 2147483648, %v78_v6  ;;  %v89_v14 = vand.u32 2147483647, %v78_v6 }
  0x19   :  { %181 = vrcp.f32 %v79_v7  ;;  %v106_v15 = vand.u32 2147483648, %v79_v7  ;;  %vm100_vm2 = vweird.f32 %v79_v7  ;;  %v104_v17 = vand.u32 2147483647, %v79_v7 }
  0x1a   :  { %v92_v19 = vor.u32 1.1754944e-38, %v91_v11  ;;  %vm90_vm5 = vcmp.eq.f32.partialorder %v89_v14, 8.507059e+37 }
  0x1b   :  { %v107_v22 = vor.u32 1.1754944e-38, %v106_v15  ;;  %vm105_vm7 = vcmp.eq.f32.partialorder %v104_v17, 8.507059e+37 }
  0x1e   :  { %v180_v8 = vpop.eup %179 }
  0x1f   :  { %v182_v9 = vpop.eup %181  ;;  %v81_v10 = vmul.f32 %v180_v8, %v78_v6  ;;  %vm86_vm1 = vweird.f32 %v180_v8 }
  0x20   :  { %v96_v12 = vmul.f32 %v182_v9, %v79_v7  ;;  %vm101_vm3 = vweird.f32 %v182_v9  ;;  %vm87_vm4 = vmor %vm85_vm0, %vm86_vm1 }
  0x21   :  { %v82_v13 = vsub.f32 1.0, %v81_v10  ;;  %vm102_vm6 = vmor %vm100_vm2, %vm101_vm3 }
  0x22   :  { %v97_v16 = vsub.f32 1.0, %v96_v12 }
  0x23   :  { %v83_v18 = vmul.f32 %v180_v8, %v82_v13 }
  0x24   :  { %v98_v20 = vmul.f32 %v182_v9, %v97_v16 }
  0x25   :  { %v84_v21 = vadd.f32 %v180_v8, %v83_v18 }
  0x26   :  { %v99_v23 = vadd.f32 %v182_v9, %v98_v20 }
  0x27   :  { %v88_v25 = vsel %vm87_vm4, %v180_v8, %v84_v21 }
  0x28   :  { %v93_v27 = vsel %vm90_vm5, %v92_v19, %v88_v25  ;;  %v103_v28 = vsel %vm102_vm6, %v182_v9, %v99_v23 }
  0x29   :  { %v108_v29 = vsel %vm105_vm7, %v107_v22, %v103_v28  ;;  %v112_v30 = vmul.f32 %v110_v24, %v93_v27 }
  0x2a   :  { %v113_v31 = vmul.f32 %v111_v26, %v108_v29 }
  0x2c   :  { %v119_v32 = vadd.f32 %v113_v31, %v112_v30 }
  0x2e   :  { %145 = vst [vmem:[#allocation8] sm:$0xff] %v119_v32 }
  0x2f   :  { %156 = dma.vmem_to_hbm [thread:$0]  %s152_s1, 128, %s154_s23, [#allocation5]  }
  0x30   :  { %259 = dma.done.wait [#allocation5], 128  }
  0x31   :  { %260 = vsyncadd [#allocation5], 4294967168 }
  0x32   :  { %161 = vsyncpa [#allocation4], 1 }
  0x33   :  { %162 = vsyncpa [#allocation7], 1 }
  0x34   :  { %163 = vsyncpa [#allocation5], 1 }

</bundles_post_ra>
